<compile_context>
chip_gen: v6e
topology: v6e:2x2x1
jax: 0.10.0
libtpu: 0.0.40
codegen_flags: <defaults>
</compile_context>

<pallas_src>
import numpy as np
import jax
import jax.numpy as jnp
from jax.experimental import pallas as pl
from jax.experimental.pallas import tpu as pltpu


_LANES = 128      # vreg lane width
_SUBLANES = 8     # f32 sublanes per vreg


def _tile_config():
    """(block byte budget, scoped VMEM limit) per TPU generation."""
    try:
        kind = jax.devices()[0].device_kind.lower()
    except Exception:
        kind = ""
    if "v5" in kind or "v6" in kind:
        # 128 MiB physical VMEM: ~8 MiB blocks, ~32 MiB of pipeline buffers.
        return 8 * 1024 * 1024, 64 * 1024 * 1024
    # v7x (64 MiB physical VMEM) or unknown chip: stay conservative.
    return 4 * 1024 * 1024, 48 * 1024 * 1024


def _choose_block(B, feat, itemsize, tile_bytes):
    """Pick (tb, tcols) satisfying the (8,128) rule without divisor searches."""
    # Sublane granularity for this dtype (f32: 8, bf16: 16, int8/fp8: 32).
    sub = max(_SUBLANES, 32 // max(int(itemsize), 1))
    feat_cols = pl.cdiv(feat, _LANES) * _LANES        # sizing only; array is never padded

    # Rows per block: whole batch if small (== full dim), else 8-row slabs.
    tb = B if B <= _SUBLANES else _SUBLANES
    rows_fp = -(-tb // sub) * sub                     # VMEM sublane-padded row footprint

    # Columns: as wide as the budget allows, a multiple of 128.
    max_cols = (tile_bytes // (rows_fp * itemsize)) // _LANES * _LANES
    tcols = int(min(feat_cols, max(_LANES, max_cols)))

    # If one column block already covers all features, spend leftover budget on rows.
    if tcols >= feat_cols and B > tb:
        cap = tile_bytes // (tcols * itemsize)
        cap = max(_SUBLANES, (cap // sub) * sub)      # multiple of 8 (and of `sub`)
        tb = B if cap >= B else int(cap)
    return int(tb), tcols


def _drop_path_kernel(x_ref, s_ref, o_ref):
    """o = x * scale[row]; scale already folds the 0/1 keep mask and 1/keep_prob."""
    o_ref[...] = x_ref[...] * s_ref[...]              # (tb, tcols) * (tb, 1) broadcast


def drop_path(x, drop_prob: float, key, training: bool = True):
    """Pallas DropPath: out = x / keep_prob * floor(keep_prob + U[0,1)) per sample."""
    if drop_prob == 0.0 or not training:
        return x

    keep_prob = 1.0 - drop_prob
    orig_shape = x.shape
    B = int(x.shape[0])
    feat = int(np.prod(x.shape[1:])) if x.ndim > 1 else 1
    itemsize = int(x.dtype.itemsize)

    # Per-sample scale: floor(keep_prob + u) in {0,1}, folded with 1/keep_prob,
    # cast once to x.dtype so the kernel multiplies in the native dtype.
    u = jax.random.uniform(key, (B,), dtype=jnp.float32)
    scale = (jnp.floor(keep_prob + u) * (1.0 / keep_prob)).astype(x.dtype).reshape(B, 1)

    # Free, copy-less row-major view of the activation.
    x2 = x.reshape(B, feat)

    tile_bytes, vmem_limit = _tile_config()
    tb, tcols = _choose_block(B, feat, itemsize, tile_bytes)

    n_row = pl.cdiv(B, tb)
    n_col = pl.cdiv(feat, tcols)

    # Put the axis with more blocks first so megacore (v7x) splits it evenly.
    if n_col >= n_row:
        grid = (n_col, n_row)
        x_map = lambda c, r: (r, c)
        s_map = lambda c, r: (r, 0)
    else:
        grid = (n_row, n_col)
        x_map = lambda r, c: (r, c)
        s_map = lambda r, c: (r, 0)

    out2 = pl.pallas_call(
        _drop_path_kernel,
        out_shape=jax.ShapeDtypeStruct((B, feat), x.dtype),
        grid=grid,
        in_specs=[
            pl.BlockSpec((tb, tcols), x_map),
            pl.BlockSpec((tb, 1), s_map),
        ],
        out_specs=pl.BlockSpec((tb, tcols), x_map),
        compiler_params=pltpu.CompilerParams(
            dimension_semantics=("parallel", "parallel"),
            vmem_limit_bytes=vmem_limit,
        ),
        cost_estimate=pl.CostEstimate(
            flops=B * feat,
            transcendentals=0,
            bytes_accessed=(2 * B * feat + B) * itemsize,
        ),
    )(x2, scale)

    return out2.reshape(orig_shape)


class DropPath:
    """Drop paths (Stochastic Depth) per sample."""

    def __init__(self, drop_prob=None):
        self.drop_prob = 0.0 if drop_prob is None else float(drop_prob)
        self.training = True

    def __call__(self, x, key):
        return drop_path(x, self.drop_prob, key, training=self.training)


if __name__ == "__main__":
    key = jax.random.PRNGKey(0)
    k_x, k_mask = jax.random.split(key)

    # Small NCHW input consistent with a conv backbone block.
    B, C, H, W = 2, 4, 16, 16
    x = jax.random.normal(k_x, (B, C, H, W), dtype=jnp.float32)

    drop_prob = 0.25
    module = DropPath(drop_prob)
    module.training = True

    out = jax.block_until_ready(module(x, k_mask))

    # Pure-JAX reference matching drop_path_f with the same per-sample mask.
    keep_prob = 1.0 - drop_prob
    u = jax.random.uniform(k_mask, (B,), dtype=jnp.float32)
    mask = jnp.floor(keep_prob + u).reshape(B, 1, 1, 1)
    ref = x / keep_prob * mask

    assert out.shape == x.shape and out.dtype == x.dtype
    np.testing.assert_allclose(np.asarray(out), np.asarray(ref), rtol=1e-5, atol=1e-6)

    # Ragged feature size (feat = 3*5*7 = 105, not a multiple of 128):
    # exercised entirely via partial-block masking — no pad / slice copies.
    x_rag = jax.random.normal(k_x, (2, 3, 5, 7), dtype=jnp.float32)
    out_rag = jax.block_until_ready(drop_path(x_rag, drop_prob, k_mask, training=True))
    ref_rag = x_rag / keep_prob * jnp.floor(keep_prob + u).reshape(2, 1, 1, 1)
    np.testing.assert_allclose(np.asarray(out_rag), np.asarray(ref_rag), rtol=1e-5, atol=1e-6)

    # Larger batch (B > 8, not a multiple of 8) to exercise row tiling + masking.
    x_big = jax.random.normal(k_x, (10, 4, 16, 16), dtype=jnp.float32)
    k_big = jax.random.PRNGKey(7)
    out_big = jax.block_until_ready(drop_path(x_big, drop_prob, k_big, training=True))
    u_big = jax.random.uniform(k_big, (10,), dtype=jnp.float32)
    ref_big = x_big / keep_prob * jnp.floor(keep_prob + u_big).reshape(10, 1, 1, 1)
    np.testing.assert_allclose(np.asarray(out_big), np.asarray(ref_big), rtol=1e-5, atol=1e-6)

    # Eval / drop_prob=0 path must be identity.
    module.training = False
    out_eval = jax.block_until_ready(module(x, k_mask))
    np.testing.assert_allclose(np.asarray(out_eval), np.asarray(x))

    print("KERNEL_OK")
</pallas_src>

<mosaic_0001>
module attributes {stable_mosaic.version = 11 : i64} {
  func.func @_drop_path_kernel(%arg0: i32, %arg1: i32, %arg2: memref<2x1024xf32, #tpu.memory_space<vmem>>, %arg3: memref<2x1xf32, #tpu.memory_space<vmem>>, %arg4: memref<2x1024xf32, #tpu.memory_space<vmem>>) attributes {dimension_semantics = [#tpu.dimension_semantics<parallel>, #tpu.dimension_semantics<parallel>], iteration_bounds = array<i64: 1, 1>, scalar_prefetch = 0 : i64, scratch_operands = 0 : i64, tpu.core_type = #tpu.core_type<tc>, window_params = [{transform_indices = @transform_0, window_bounds = array<i64: 2, 1024>}, {transform_indices = @transform_1, window_bounds = array<i64: 2, 1>}, {transform_indices = @transform_2, window_bounds = array<i64: 2, 1024>}]} {
    %c0 = arith.constant 0 : index
    %c0_0 = arith.constant 0 : index
    %0 = vector.load %arg2[%c0, %c0_0] : memref<2x1024xf32, #tpu.memory_space<vmem>>, vector<2x1024xf32>
    %c0_1 = arith.constant 0 : index
    %c0_2 = arith.constant 0 : index
    %1 = vector.load %arg3[%c0_1, %c0_2] : memref<2x1xf32, #tpu.memory_space<vmem>>, vector<2x1xf32>
    %2 = vector.broadcast %1 : vector<2x1xf32> to vector<2x1024xf32>
    %3 = arith.mulf %0, %2 : vector<2x1024xf32>
    %c0_3 = arith.constant 0 : index
    %c0_4 = arith.constant 0 : index
    %4 = vector.load %arg4[%c0_3, %c0_4] : memref<2x1024xf32, #tpu.memory_space<vmem>>, vector<2x1024xf32>
    tpu.vector_store %arg4[%c0_3, %c0_4], %3 {strides = array<i32>} : memref<2x1024xf32, #tpu.memory_space<vmem>>, vector<2x1024xf32>,
    return
  }
  func.func @transform_0(%arg0: i32, %arg1: i32) -> (i32, i32) {
    %c0_i32 = arith.constant 0 : i32
    return %arg1, %arg0 : i32, i32
  }
  func.func @transform_1(%arg0: i32, %arg1: i32) -> (i32, i32) {
    %c0_i32 = arith.constant 0 : i32
    %c0_i32_0 = arith.constant 0 : i32
    return %arg1, %c0_i32 : i32, i32
  }
  func.func @transform_2(%arg0: i32, %arg1: i32) -> (i32, i32) {
    %c0_i32 = arith.constant 0 : i32
    return %arg1, %arg0 : i32, i32
  }
}

</mosaic_0001>

<bundles_post_ra>
// kernel: tpu_custom_call.1
= control target key start
LH: loop header
LB: loop body
LE: loop exit
PB: predicated region body
PF: predicated region fallthrough
CT: control target
= control target key end

     0   :  { %7 = vsyncpa [#allocation3], 0  ;;  %s135_s0 = inlined_call_operand.hbm [shape: f32[2,1024], index: 0, kind: input, shape index: {}]   ;;  %s136_s1 = inlined_call_operand.vmem [shape: f32[2,1], index: 1, kind: input, shape index: {}]   ;;  %s137_s2 = inlined_call_operand.hbm [shape: f32[2,1024], index: 2, kind: output, shape index: {}]  }
   0x1   :  { %8 = vsyncpa [#allocation4], 0  ;;  %s107_s9 = smov [#allocation2]  }
   0x2   :  { %s15_s10 = sshll.u32 %s107_s9, 4  ;;  %s16_s10 = int_to_ptr.vmem [resolvable:$true] %s15_s10 }
   0x3   :  { %s71_s11 = scalar_lea.vmem %s16_s10, 256  ;;  %p76_p1 = scmp.lt.s32.totalorder %s16_s10, %s16_s10 }
   0x4   :  { %p72_p0 = scmp.ne.s32.totalorder %s16_s10, %s71_s11  ;;  %p77_p2 = scmp.lt.s32.totalorder %s71_s11, %s71_s11 }
   0x6   :  { %p78_p3 = por %p77_p2, %p76_p1 }
   0x8   :  { %p79_p4 = pnand %p78_p3, %p72_p0 }
   0xa   :  { %82 = shalt.err (!%p79_p4)
}
   0xb   :  { %18 = dma.hbm_to_vmem [thread:$0]  %s135_s0, 256, %s16_s10, [#allocation3]  }
   0xc   :  { %103 = dma.done.wait [#allocation3], 256  }
   0xd   :  { %104 = vsyncadd [#allocation3], 4294967040  ;;  %v108_v0 = vmov 0   ;;  %v26_v1 = vld [vmem:[%s136_s1] sm:$0x3]  ;;  %v34_v4 = vlaneseq  ;;  %v25_v10 = vld [vmem:[#allocation2 + $0x8] sm:$0xff] }
   0xe   :  { %62 = vset.pattern.permute.xlu0 %v108_v0  ;;  %v109_v2 = vmov 269488144   ;;  %v24_v9 = vld [vmem:[#allocation2] sm:$0xff]  ;;  %s110_s16 = smov [#allocation5]  }
   0xf   :  { %29 = vperm.xlu0 %62, %v26_v1   ;;  %v32_v3 = vunpack.c.l.s4 %v109_v2  ;;  %v35_v6 = vshrl.u32 %v34_v4, 7  ;;  %s49_s0 = sshll.u32 %s110_s16, 4  ;;  %s50_s0 = int_to_ptr.vmem [resolvable:$true] %s49_s0 }
  0x10   :  { %s83_s17 = scalar_lea.vmem %s50_s0, 256  ;;  %p88_p6 = scmp.lt.s32.totalorder %s50_s0, %s50_s0 }
  0x11   :  { %v33_v5 = vunpack.c.0.s8 %v32_v3  ;;  %p84_p5 = scmp.ne.s32.totalorder %s50_s0, %s83_s17  ;;  %p89_p7 = scmp.lt.s32.totalorder %s83_s17, %s83_s17 }
  0x13   :  { %v36_v7 = vsub.s32 %v33_v5, %v35_v6  ;;  %p90_p8 = por %p89_p7, %p88_p6 }
  0x15   :  { %p91_p9 = pnand %p90_p8, %p84_p5 }
  0x8a   :  { %v30_v8 = vpop.permute.xlu0 %29 }
  0x8b   :  { %v37_v11 = vrot.slane %v30_v8, %v36_v7 }
  0x8d   :  { %v39_v12 = vmul.f32 %v37_v11, %v24_v9  ;;  %v40_v13 = vmul.f32 %v37_v11, %v25_v10 }
  0x8f   :  { %41 = vst [vmem:[#allocation5] sm:$0xff] %v39_v12  ;;  %42 = vst [vmem:[#allocation5 + $0x8] sm:$0xff] %v40_v13 }
  0x90   :  { %94 = shalt.err (!%p91_p9)
}
  0x91   :  { %52 = dma.vmem_to_hbm [thread:$0]  %s50_s0, 256, %s137_s2, [#allocation4]  }
  0x92   :  { %105 = dma.done.wait [#allocation4], 256  }
  0x93   :  { %106 = vsyncadd [#allocation4], 4294967040 }
  0x94   :  { %56 = vsyncpa [#allocation3], 1 }
  0x95   :  { %57 = vsyncpa [#allocation4], 1 }

</bundles_post_ra>
